<compile_context>
chip_gen: v7x
topology: tpu7x:2x2x1
jax: 0.10.0
libtpu: 0.0.40
codegen_flags: <defaults>
</compile_context>

<pallas_src>
import jax
import jax.numpy as jnp
from jax.experimental import pallas as pl
from jax.experimental.pallas import tpu as pltpu


_LANE = 128
# Only materialize the repeat(weight, H*W) bias row when it is this small.
_BIAS_ROW_MAX_BYTES = 512 * 1024


def _sublane_pack(dtype):
    """Sublane packing multiple for a dtype: 8 for f32, 16 for bf16, 32 for int8."""
    itemsize = jnp.dtype(dtype).itemsize
    return max(8, 32 // max(1, itemsize))


def _default_target_block_bytes():
    """Per-generation block-size target (conservative when unsure)."""
    try:
        kind = jax.devices()[0].device_kind.lower()
    except Exception:
        return 2 * 1024 * 1024
    if ("v6" in kind) or ("v7" in kind) or ("7x" in kind):
        # 2 x (in + out) x 4 MiB = 16 MiB double-buffered, under the 32 MiB
        # scoped-VMEM default on v6e/v7x; halves the per-step overhead tax.
        return 4 * 1024 * 1024
    # v5e (16 MiB scoped default) and unknown chips: stay at 2 MiB.
    return 2 * 1024 * 1024


def _pick_2d_tiles(rows, lanes, itemsize, pack, target_bytes, lane_divisible):
    """Pick (row_tile, lane_tile) for a (rows, lanes) slab, ~target_bytes/block."""
    # Lane (last-dim) tile: multiple of 128, or the full extent.
    if not lane_divisible:
        tile_l = lanes
    elif lanes * itemsize * pack <= target_bytes:
        tile_l = lanes
    else:
        tile_l = max(_LANE, (target_bytes // (pack * itemsize)) // _LANE * _LANE)
        tile_l = min(tile_l, lanes)
    # Row (second-to-last dim) tile: multiple of the sublane packing, or full.
    rows_fit = max(1, target_bytes // max(1, tile_l * itemsize))
    if rows_fit >= rows:
        tile_r = rows
    else:
        tile_r = min(rows, max(pack, (rows_fit // pack) * pack))
    return tile_r, tile_l


def _maybe_split_for_overlap(tile_r, tile_l, rows, lanes, itemsize, pack,
                             lane_divisible, outer_steps,
                             min_steps=4, min_block_bytes=512 * 1024):
    """Halve tiles until the grid has a few steps (DMA/compute overlap, 2 TCs)."""
    def steps(tr, tl):
        return outer_steps * pl.cdiv(rows, tr) * pl.cdiv(lanes, tl)

    while steps(tile_r, tile_l) < min_steps:
        if (lane_divisible and tile_l % (2 * _LANE) == 0
                and tile_r * (tile_l // 2) * itemsize >= min_block_bytes):
            tile_l //= 2
        elif (tile_r % (2 * pack) == 0
                and (tile_r // 2) * tile_l * itemsize >= min_block_bytes):
            tile_r //= 2
        else:
            break
    return tile_r, tile_l


# ---------------------------------------------------------------------------
# Kernels
# ---------------------------------------------------------------------------

def _bias_kernel_rows(b_ref, x_ref, o_ref):
    # b_ref: (1, tile_l) lane-dense bias row; x_ref/o_ref: (tile_n, tile_l).
    # Sublane broadcast + VPU add.
    o_ref[...] = x_ref[...] + b_ref[...]


def _bias_kernel_chan(b_ref, x_ref, o_ref):
    # b_ref: (tile_c, 1) per-channel bias column; x_ref/o_ref: (1, tile_c, tile_hw).
    # Lane broadcast + VPU add.
    o_ref[...] = x_ref[...] + b_ref[...][None, :, :]


# ---------------------------------------------------------------------------
# Layout wrappers
# ---------------------------------------------------------------------------

def _bias_rows_call(x, weight, target_bytes):
    """Small-plane layout: x -> (N, C*H*W), lane-dense bias row."""
    N, C, H, W = x.shape
    HW, CHW = H * W, C * H * W
    dt = x.dtype
    itemsize = jnp.dtype(dt).itemsize
    pack = _sublane_pack(dt)

    x2d = x.reshape(N, CHW)
    b_row = jnp.repeat(weight.astype(dt), HW)[None, :]          # (1, C*H*W)

    lane_div = (CHW % _LANE == 0) and CHW >= _LANE
    tile_n, tile_l = _pick_2d_tiles(N, CHW, itemsize, pack, target_bytes, lane_div)
    tile_n, tile_l = _maybe_split_for_overlap(
        tile_n, tile_l, N, CHW, itemsize, pack, lane_div, outer_steps=1)
    grid = (pl.cdiv(N, tile_n), pl.cdiv(CHW, tile_l))

    out2d = pl.pallas_call(
        _bias_kernel_rows,
        out_shape=jax.ShapeDtypeStruct((N, CHW), dt),
        grid=grid,
        in_specs=[
            # Bias row: constant across the N-tile axis; with the lane axis
            # innermost it is only re-fetched when the lane tile changes.
            pl.BlockSpec((1, tile_l), lambda i, j: (0, j)),
            pl.BlockSpec((tile_n, tile_l), lambda i, j: (i, j)),
        ],
        out_specs=pl.BlockSpec((tile_n, tile_l), lambda i, j: (i, j)),
        compiler_params=pltpu.CompilerParams(
            dimension_semantics=("parallel", "parallel")),
    )(b_row, x2d)
    return out2d.reshape(N, C, H, W)


def _bias_chan_call(x, weight, target_bytes):
    """Large-plane layout: x -> (N, C, H*W), bias keyed by the channel grid axis."""
    N, C, H, W = x.shape
    HW = H * W
    dt = x.dtype
    itemsize = jnp.dtype(dt).itemsize
    pack = _sublane_pack(dt)

    x3d = x.reshape(N, C, HW)
    b_col = weight.astype(dt).reshape(C, 1)                      # no jnp.tile(NC)

    lane_div = (HW % _LANE == 0) and HW >= _LANE
    tile_c, tile_hw = _pick_2d_tiles(C, HW, itemsize, pack, target_bytes, lane_div)
    tile_c, tile_hw = _maybe_split_for_overlap(
        tile_c, tile_hw, C, HW, itemsize, pack, lane_div, outer_steps=N)
    grid = (N, pl.cdiv(C, tile_c), pl.cdiv(HW, tile_hw))

    out3d = pl.pallas_call(
        _bias_kernel_chan,
        out_shape=jax.ShapeDtypeStruct((N, C, HW), dt),
        grid=grid,
        in_specs=[
            # Bias column depends only on the channel tile; the HW axis is the
            # innermost grid axis so the (tiny) bias DMA is not re-issued while
            # sweeping a plane.
            pl.BlockSpec((tile_c, 1), lambda n, c, j: (c, 0)),
            pl.BlockSpec((1, tile_c, tile_hw), lambda n, c, j: (n, c, j)),
        ],
        out_specs=pl.BlockSpec((1, tile_c, tile_hw), lambda n, c, j: (n, c, j)),
        compiler_params=pltpu.CompilerParams(
            dimension_semantics=("parallel", "parallel", "parallel")),
    )(b_col, x3d)
    return out3d.reshape(N, C, H, W)


def bias_forward(x, weight, *, target_block_bytes=None):
    """x: (N, C, H, W), weight: (C,). Returns x + weight[None, :, None, None]."""
    N, C, H, W = x.shape
    assert weight.shape == (C,)
    if target_block_bytes is None:
        target_block_bytes = _default_target_block_bytes()

    itemsize = jnp.dtype(x.dtype).itemsize
    if C * H * W * itemsize <= _BIAS_ROW_MAX_BYTES:
        # Small planes (incl. H*W < 128 / non-128-multiple): fold C into the
        # lane axis -> unmasked lane-dense stores + resident bias row.
        return _bias_rows_call(x, weight, target_block_bytes)
    # Large planes: channel-keyed bias, HW blocked so blocks never blow VMEM.
    return _bias_chan_call(x, weight, target_block_bytes)


if __name__ == "__main__":
    key = jax.random.PRNGKey(0)
    k_x, k_w, k_x2, k_w2 = jax.random.split(key, 4)

    # Primary small case consistent with the module: batch=2, channels=4, 16x16.
    N, C, H, W = 2, 4, 16, 16
    x = jax.random.normal(k_x, (N, C, H, W), dtype=jnp.float32)
    # Deterministic parameter init matching nn.init uniform_(-0.001, 0.001).
    weight = jax.random.uniform(k_w, (C,), dtype=jnp.float32,
                                minval=-0.001, maxval=0.001)

    y = jax.block_until_ready(bias_forward(x, weight))
    y_ref = x + weight[None, :, None, None]
    assert jnp.allclose(y, y_ref, atol=1e-6), "row-layout mismatch vs reference"

    # Secondary check exercising the large-plane (channel) layout path.
    N2, C2, H2, W2 = 2, 64, 64, 64
    x2 = jax.random.normal(k_x2, (N2, C2, H2, W2), dtype=jnp.float32)
    weight2 = jax.random.uniform(k_w2, (C2,), dtype=jnp.float32,
                                 minval=-0.001, maxval=0.001)
    y2 = jax.block_until_ready(bias_forward(x2, weight2))
    y2_ref = x2 + weight2[None, :, None, None]
    assert jnp.allclose(y2, y2_ref, atol=1e-6), "chan-layout mismatch vs reference"

    print("KERNEL_OK")
</pallas_src>

<mosaic_0001>
module attributes {stable_mosaic.version = 11 : i64} {
  func.func @_bias_kernel_rows(%arg0: i32, %arg1: i32, %arg2: memref<1x1024xf32, #tpu.memory_space<vmem>>, %arg3: memref<2x1024xf32, #tpu.memory_space<vmem>>, %arg4: memref<2x1024xf32, #tpu.memory_space<vmem>>) attributes {dimension_semantics = [#tpu.dimension_semantics<parallel>, #tpu.dimension_semantics<parallel>], iteration_bounds = array<i64: 1, 1>, scalar_prefetch = 0 : i64, scratch_operands = 0 : i64, tpu.core_type = #tpu.core_type<tc>, window_params = [{transform_indices = @transform_0, window_bounds = array<i64: 1, 1024>}, {transform_indices = @transform_1, window_bounds = array<i64: 2, 1024>}, {transform_indices = @transform_2, window_bounds = array<i64: 2, 1024>}]} {
    %c0 = arith.constant 0 : index
    %c0_0 = arith.constant 0 : index
    %0 = vector.load %arg3[%c0, %c0_0] : memref<2x1024xf32, #tpu.memory_space<vmem>>, vector<2x1024xf32>
    %c0_1 = arith.constant 0 : index
    %c0_2 = arith.constant 0 : index
    %1 = vector.load %arg2[%c0_1, %c0_2] : memref<1x1024xf32, #tpu.memory_space<vmem>>, vector<1x1024xf32>
    %2 = vector.broadcast %1 : vector<1x1024xf32> to vector<2x1024xf32>
    %3 = arith.addf %0, %2 : vector<2x1024xf32>
    %c0_3 = arith.constant 0 : index
    %c0_4 = arith.constant 0 : index
    %4 = vector.load %arg4[%c0_3, %c0_4] : memref<2x1024xf32, #tpu.memory_space<vmem>>, vector<2x1024xf32>
    tpu.vector_store %arg4[%c0_3, %c0_4], %3 {strides = array<i32>} : memref<2x1024xf32, #tpu.memory_space<vmem>>, vector<2x1024xf32>,
    return
  }
  func.func @transform_0(%arg0: i32, %arg1: i32) -> (i32, i32) {
    %c0_i32 = arith.constant 0 : i32
    %c0_i32_0 = arith.constant 0 : i32
    return %c0_i32, %arg1 : i32, i32
  }
  func.func @transform_1(%arg0: i32, %arg1: i32) -> (i32, i32) {
    %c0_i32 = arith.constant 0 : i32
    return %arg0, %arg1 : i32, i32
  }
  func.func @transform_2(%arg0: i32, %arg1: i32) -> (i32, i32) {
    %c0_i32 = arith.constant 0 : i32
    return %arg0, %arg1 : i32, i32
  }
}

</mosaic_0001>

<bundles_post_ra>
// kernel: tpu_custom_call.1
= control target key start
LH: loop header
LB: loop body
LE: loop exit
PB: predicated region body
PF: predicated region fallthrough
CT: control target
= control target key end

     0   :  { %7 = vsyncpa [#allocation3], 0  ;;  %s259_s0 = inlined_call_operand.hbm [shape: f32[1,1024], index: 0, kind: input, shape index: {}]   ;;  %s260_s1 = inlined_call_operand.hbm [shape: f32[2,1024], index: 1, kind: input, shape index: {}]   ;;  %s261_s2 = inlined_call_operand.hbm [shape: f32[2,1024], index: 2, kind: output, shape index: {}]  }
   0x1   :  { %8 = vsyncpa [#allocation6], 0 }
   0x2   :  { %9 = vsyncpa [#allocation4], 0  ;;  %s204_s9 = smov [#allocation2]   ;;  %s205_s11 = smov [#allocation5]  }
   0x3   :  { %s16_s10 = sshll.u32 %s204_s9, 4  ;;  %s26_s12 = sshll.u32 %s205_s11, 4  ;;  %s17_s10 = int_to_ptr.vmem [resolvable:$true] %s16_s10  ;;  %s27_s12 = int_to_ptr.vmem [resolvable:$true] %s26_s12 }
   0x4   :  { %s132_s15 = scalar_lea.hbm %s259_s0, 128 }
   0x5   :  { %p133_p0 = scmp.ne.s32.totalorder %s259_s0, %s132_s15  ;;  %p136_p1 = scmp.lt.u32.totalorder %s132_s15, %s259_s0 }
   0x7   :  { %p138_p2 = pnand %p136_p1, %p133_p0 }
   0x9   :  { %141 = shalt.err (!%p138_p2)
}
   0xa   :  { %s142_s20 = scalar_lea.vmem %s17_s10, 128  ;;  %p147_p4 = scmp.lt.s32.totalorder %s17_s10, %s17_s10 }
   0xb   :  { %p143_p3 = scmp.ne.s32.totalorder %s17_s10, %s142_s20  ;;  %p148_p5 = scmp.lt.s32.totalorder %s142_s20, %s142_s20 }
   0xd   :  { %p149_p6 = por %p148_p5, %p147_p4 }
   0xf   :  { %p150_p7 = pnand %p149_p6, %p143_p3 }
  0x11   :  { %153 = shalt.err (!%p150_p7)
}
  0x12   :  { %19 = dma.hbm_to_vmem [thread:$0]  %s259_s0, 128, %s17_s10, [#allocation3]  }
  0x13   :  { %s154_s25 = scalar_lea.hbm %s260_s1, 256 }
  0x14   :  { %p155_p8 = scmp.ne.s32.totalorder %s260_s1, %s154_s25  ;;  %p158_p9 = scmp.lt.u32.totalorder %s154_s25, %s260_s1 }
  0x16   :  { %p160_p10 = pnand %p158_p9, %p155_p8 }
  0x18   :  { %163 = shalt.err (!%p160_p10)
}
  0x19   :  { %s164_s30 = scalar_lea.vmem %s27_s12, 256  ;;  %p169_p12 = scmp.lt.s32.totalorder %s27_s12, %s27_s12 }
  0x1a   :  { %p165_p11 = scmp.ne.s32.totalorder %s27_s12, %s164_s30  ;;  %p170_p13 = scmp.lt.s32.totalorder %s164_s30, %s164_s30 }
  0x1c   :  { %p171_p0 = por %p170_p13, %p169_p12 }
  0x1e   :  { %p172_p1 = pnand %p171_p0, %p165_p11 }
  0x20   :  { %175 = shalt.err (!%p172_p1)
}
  0x21   :  { %29 = dma.hbm_to_vmem [thread:$0]  %s260_s1, 256, %s27_s12, [#allocation6]  }
  0x22   :  { %198 = dma.done.wait [#allocation3], 128  }
  0x23   :  { %199 = vsyncadd [#allocation3], 4294967168 }
  0x24   :  { %200 = dma.done.wait [#allocation6], 256  }
  0x25   :  { %201 = vsyncadd [#allocation6], 4294967040  ;;  %v40_v0 = vlaneseq  ;;  %v206_v1 = vmov 1983009808   ;;  %v38_v13 = vld [vmem:[#allocation2] sm:$0xff]  ;;  %v36_v29 = vld [vmem:[#allocation5] sm:$0xff] }
  0x26   :  { %v75_v2 = vunpack.c.l.s4 %v206_v1  ;;  %v37_v33 = vld [vmem:[#allocation5 + $0x8] sm:$0xff]  ;;  %s207_s1 = smov [#allocation7]  }
  0x27   :  { %v41_v3 = vshrl.u32 %v40_v0, 7  ;;  %s118_s4 = sshll.u32 %s207_s1, 4  ;;  %s119_s4 = int_to_ptr.vmem [resolvable:$true] %s118_s4 }
  0x28   :  { %v76_v4 = vunpack.c.0.s8 %v75_v2  ;;  %s176_s5 = scalar_lea.vmem %s119_s4, 256  ;;  %p181_p3 = scmp.lt.s32.totalorder %s119_s4, %s119_s4 }
  0x29   :  { %v42_v5 = vsub.s32 0, %v41_v3  ;;  %v46_v6 = vsub.s32 1, %v41_v3  ;;  %v50_v7 = vsub.s32 2, %v41_v3  ;;  %v54_v8 = vsub.s32 3, %v41_v3  ;;  %p177_p2 = scmp.ne.s32.totalorder %s119_s4, %s176_s5  ;;  %p182_p4 = scmp.lt.s32.totalorder %s176_s5, %s176_s5 }
  0x2a   :  { %v58_v9 = vsub.s32 4, %v41_v3  ;;  %v62_v10 = vsub.s32 5, %v41_v3  ;;  %v66_v11 = vsub.s32 6, %v41_v3  ;;  %v70_v12 = vsub.s32 7, %v41_v3 }
  0x2b   :  { %v79_v14 = vsub.s32 %v76_v4, %v41_v3  ;;  %v43_v15 = vrot.slane %v38_v13, %v42_v5  ;;  %v47_v16 = vrot.slane %v38_v13, %v46_v6  ;;  %v51_v17 = vrot.slane %v38_v13, %v50_v7  ;;  %p183_p5 = por %p182_p4, %p181_p3 }
  0x2c   :  { %v55_v18 = vrot.slane %v38_v13, %v54_v8  ;;  %v59_v19 = vrot.slane %v38_v13, %v58_v9  ;;  %v63_v20 = vrot.slane %v38_v13, %v62_v10  ;;  %v67_v21 = vrot.slane %v38_v13, %v66_v11 }
  0x2d   :  { %v71_v22 = vrot.slane %v38_v13, %v70_v12  ;;  %v72_v23 = vcombine.low %v43_v15, %v47_v16  ;;  %p184_p6 = pnand %p183_p5, %p177_p2 }
  0x2e   :  { %v73_v24 = vcombine.low %v51_v17, %v55_v18  ;;  %v89_v25 = vcombine.low %v59_v19, %v63_v20 }
  0x2f   :  { %v90_v26 = vcombine.low %v67_v21, %v71_v22  ;;  %v80_v27 = vrot.slane %v72_v23, %v79_v14 }
  0x30   :  { %v87_v28 = vrot.slane %v73_v24, %v79_v14  ;;  %v97_v30 = vrot.slane %v89_v25, %v79_v14 }
  0x31   :  { %v104_v31 = vrot.slane %v90_v26, %v79_v14 }
  0x32   :  { %v88_v32 = vcombine.low %v80_v27, %v87_v28 }
  0x33   :  { %v105_v34 = vcombine.low %v97_v30, %v104_v31 }
  0x34   :  { %v108_v35 = vadd.f32 %v88_v32, %v36_v29 }
  0x35   :  { %v109_v36 = vadd.f32 %v105_v34, %v37_v33 }
  0x36   :  { %110 = vst [vmem:[#allocation7] sm:$0xff] %v108_v35 }
  0x37   :  { %111 = vst [vmem:[#allocation7 + $0x8] sm:$0xff] %v109_v36 }
  0x38   :  { %187 = shalt.err (!%p184_p6)
}
  0x39   :  { %s188_s8 = scalar_lea.hbm %s261_s2, 256 }
  0x3a   :  { %p189_p7 = scmp.ne.s32.totalorder %s261_s2, %s188_s8  ;;  %p192_p8 = scmp.lt.u32.totalorder %s188_s8, %s261_s2 }
  0x3c   :  { %p194_p9 = pnand %p192_p8, %p189_p7 }
  0x3e   :  { %197 = shalt.err (!%p194_p9)
}
  0x3f   :  { %121 = dma.vmem_to_hbm [thread:$0]  %s119_s4, 256, %s261_s2, [#allocation4]  }
  0x40   :  { %202 = dma.done.wait [#allocation4], 256  }
  0x41   :  { %203 = vsyncadd [#allocation4], 4294967040 }
  0x42   :  { %125 = vsyncpa [#allocation3], 1 }
  0x43   :  { %126 = vsyncpa [#allocation6], 1 }
  0x44   :  { %127 = vsyncpa [#allocation4], 1 }

</bundles_post_ra>
